<compile_context>
chip_gen: v7x
topology: tpu7x:2x2x1
jax: 0.10.0
libtpu: 0.0.40
codegen_flags: <defaults>
</compile_context>

<pallas_src>
import functools

import jax
import jax.numpy as jnp
from jax import lax
from jax.experimental import pallas as pl
from jax.experimental.pallas import tpu as pltpu

GAMMA = 0.5

_LANES = 128
_SUB_R = 512               # rows per inner accumulation slab (512*128*4 B = 256 KiB f32)
_TILE_R_MAX = 16384        # rows per grid block (8 MiB f32; 16 MiB double-buffered)
_N_CHUNKS = 2              # leading "parallel" grid axis (both TensorCores on v7x)
_MIN_TILES_PER_CHUNK = 4   # target tiles per chunk for TC load balance


def _round_up(x, m):
    return ((x + m - 1) // m) * m


def _pick_acc_sub(rows):
    """Widest accumulator sublane count (<= 64) that divides `rows`."""
    for s in (64, 32, 16, 8):
        if rows % s == 0:
            return s
    return 1


def _r1_sum_sq_kernel(g_ref, o_ref, *, tile_r, sub_r, acc_sub, rows_valid,
                      tiles_per_chunk, need_mask):
    """Accumulate sum-of-squares of a (tile_r, 128) gradient tile into the resident
    (1, acc_sub, 128) output block of the current chunk.

    Grid = (chunk [parallel], tile-within-chunk [arbitrary/reduction]).  The output
    block index depends only on the chunk, so it stays resident across the inner axis
    and acts as the accumulator (init at t == 0); the single cross-lane reduce and the
    gamma / batch scaling happen once in the wrapper."""
    t = pl.program_id(1)

    @pl.when(t == 0)
    def _():
        o_ref[...] = jnp.zeros_like(o_ref)

    n_sub = tile_r // sub_r

    def slab_sum(g, base_row, masked):
        # g: (rows, 128) f32.  Reducing sublane-major groups of `acc_sub` rows keeps
        # acc_sub/8 independent accumulator vregs per lane group (ILP + accuracy)
        # instead of a single serial (8, 128) add chain.
        if masked:
            row_ids = lax.broadcasted_iota(jnp.int32, g.shape, 0) + base_row
            g = jnp.where(row_ids < rows_valid, g, jnp.float32(0.0))
        sq = g * g
        rows = g.shape[0]
        return jnp.sum(sq.reshape(rows // acc_sub, acc_sub, _LANES), axis=0)

    def tile_sum(masked, row_start):
        if n_sub == 1:
            return slab_sum(g_ref[...].astype(jnp.float32), row_start, masked)

        def body(j, acc):
            off = pl.multiple_of(j * sub_r, sub_r)
            g = g_ref[pl.ds(off, sub_r), :].astype(jnp.float32)
            return acc + slab_sum(g, row_start + off, masked)

        return lax.fori_loop(0, n_sub, body,
                             jnp.zeros((acc_sub, _LANES), jnp.float32),
                             unroll=(n_sub <= 8))

    if not need_mask:
        o_ref[...] += tile_sum(False, 0).reshape(o_ref.shape)
    else:
        c = pl.program_id(0)
        row_start = (c * tiles_per_chunk + t) * tile_r

        # Steady state: fully-valid tiles take the unmasked fast path (pure VPU).
        @pl.when(row_start + tile_r <= rows_valid)
        def _():
            o_ref[...] += tile_sum(False, 0).reshape(o_ref.shape)

        # Single partial edge tile: mask padding rows before squaring (so unspecified
        # edge-block padding / NaN garbage cannot propagate).
        @pl.when(jnp.logical_and(row_start < rows_valid,
                                 row_start + tile_r > rows_valid))
        def _():
            o_ref[...] += tile_sum(True, row_start).reshape(o_ref.shape)

        # Fully over-covered (clamped) tiles (row_start >= rows_valid) are skipped.


def r1_penalty_from_grad(grad_real: jax.Array) -> jax.Array:
    """gamma * mean_b( sum_f grad[b, f]^2 ), with the bulk reduction in a Pallas kernel."""
    b = grad_real.shape[0]
    n = grad_real.size
    scale = GAMMA / float(b)

    flat = grad_real.reshape(-1)              # free view of the contiguous gradient
    r = n // _LANES
    tail = n - r * _LANES

    # Ragged tail (< 128 elements): tiny plain-JAX sum-of-squares instead of a padded
    # full-HBM copy of the gradient.
    tail_ss = jnp.float32(0.0)
    if tail:
        tail_ss = jnp.sum(jnp.square(flat[r * _LANES:].astype(jnp.float32)))

    if r == 0:
        return (tail_ss * scale).astype(jnp.float32)

    g2d = flat[: r * _LANES].reshape(r, _LANES)   # lane-dense 128-aligned prefix

    itemsize = jnp.dtype(grad_real.dtype).itemsize

    if r <= _SUB_R:
        # Small gradient: one block covering the full array exactly (block == full
        # dims is always legal for any dtype), single chunk, no masking.
        tile_r = r
        sub_r = tile_r
        acc_sub = _pick_acc_sub(tile_r)
        n_chunks = 1
        tiles_per_chunk = 1
        total_tiles = 1
    else:
        # Large gradient: tile rows are multiples of _SUB_R (512, a multiple of every
        # dtype's sublane tiling: 8/16/32), sized so each chunk gets at least
        # _MIN_TILES_PER_CHUNK tiles (TC load balance on v7x) but capped at
        # _TILE_R_MAX for the VMEM double-buffering budget.
        r_up = _round_up(r, _SUB_R)
        balanced = _round_up(-(-r_up // (_N_CHUNKS * _MIN_TILES_PER_CHUNK)), _SUB_R)
        tile_r = min(_TILE_R_MAX, max(_SUB_R, balanced))      # tile_r <= r here
        sub_r = _SUB_R
        acc_sub = 64
        total_tiles = -(-r // tile_r)
        n_chunks = _N_CHUNKS if total_tiles >= _N_CHUNKS else 1
        tiles_per_chunk = -(-total_tiles // n_chunks)

    grid_tiles = n_chunks * tiles_per_chunk
    need_clamp = grid_tiles > total_tiles          # rectangular grid over-covers tiles
    need_mask = grid_tiles * tile_r > r            # partial edge tile and/or over-cover

    if need_clamp:
        def in_index(c, t):
            return (jnp.minimum(c * tiles_per_chunk + t, total_tiles - 1), 0)
    else:
        def in_index(c, t):
            return (c * tiles_per_chunk + t, 0)

    kernel = functools.partial(
        _r1_sum_sq_kernel,
        tile_r=tile_r,
        sub_r=sub_r,
        acc_sub=acc_sub,
        rows_valid=r,
        tiles_per_chunk=tiles_per_chunk,
        need_mask=need_mask,
    )

    out_bytes = n_chunks * acc_sub * _LANES * 4
    cost = pl.CostEstimate(
        flops=2 * r * _LANES,
        transcendentals=0,
        bytes_accessed=r * _LANES * itemsize + out_bytes,
    )

    partials = pl.pallas_call(
        kernel,
        out_shape=jax.ShapeDtypeStruct((n_chunks, acc_sub, _LANES), jnp.float32),
        grid_spec=pltpu.PrefetchScalarGridSpec(
            num_scalar_prefetch=0,
            grid=(n_chunks, tiles_per_chunk),
            in_specs=[pl.BlockSpec((tile_r, _LANES), in_index)],
            out_specs=pl.BlockSpec((1, acc_sub, _LANES), lambda c, t: (c, 0, 0)),
        ),
        compiler_params=pltpu.CompilerParams(
            dimension_semantics=("parallel", "arbitrary"),
            vmem_limit_bytes=32 * 1024 * 1024,
        ),
        cost_estimate=cost,
    )(g2d)

    # Single tiny cross-lane reduce + gamma/B scale (once, outside the hot loop).
    total = jnp.sum(partials) + tail_ss
    return (total * scale).astype(jnp.float32)


def r1_loss(disc_fn, disc_params, real_sample: jax.Array) -> jax.Array:
    """
    JAX equivalent of R1.forward(prediction_real, real_sample):
    torch.autograd.grad(prediction_real.sum(), real_sample) -> jax.grad of the
    discriminator's summed output wrt its input, then the Pallas reduction.
    """
    # TODO(synk): the autograd step has no Pallas equivalent; fusing the squared-norm
    # accumulation into the discriminator backward via custom VJP would save one full
    # HBM read of the gradient (the only remaining >1.5x lever on all generations).
    grad_real = jax.grad(lambda x: jnp.sum(disc_fn(disc_params, x)))(real_sample)
    return r1_penalty_from_grad(grad_real)


# --- A tiny deterministic "discriminator" so prediction_real has a real autodiff graph ---
def make_disc_params(c, h, w, dtype=jnp.float32):
    key = jax.random.PRNGKey(42)
    k1, k2 = jax.random.split(key)
    f = c * h * w
    weight = jax.random.normal(k1, (f, 1), dtype) * 0.02
    bias = jax.random.normal(k2, (1,), dtype) * 0.01
    return {"w": weight, "b": bias}


def disc_apply(params, x):
    # x: (B, C, H, W) NCHW  ->  prediction: (B, 1)
    b = x.shape[0]
    xf = x.reshape(b, -1)
    return jnp.tanh(xf @ params["w"] + params["b"])


if __name__ == "__main__":
    B, C, H, W = 2, 4, 16, 16
    key = jax.random.PRNGKey(0)
    real_sample = jax.random.normal(key, (B, C, H, W), jnp.float32)

    params = make_disc_params(C, H, W)

    loss = r1_loss(disc_apply, params, real_sample)
    loss = jax.block_until_ready(loss)

    # Pure-JAX reference for correctness check.
    grad_ref = jax.grad(lambda x: jnp.sum(disc_apply(params, x)))(real_sample)
    ref = GAMMA * jnp.mean(jnp.sum(grad_ref.reshape(B, -1) ** 2, axis=1))
    ref = jax.block_until_ready(ref)

    assert jnp.allclose(loss, ref, rtol=1e-5, atol=1e-6), (loss, ref)
    print("KERNEL_OK")
</pallas_src>

<mosaic_0001>
module attributes {stable_mosaic.version = 11 : i64} {
  func.func @_r1_sum_sq_kernel(%arg0: i32, %arg1: i32, %arg2: memref<16x128xf32, #tpu.memory_space<vmem>>, %arg3: memref<1x16x128xf32, #tpu.memory_space<vmem>>) attributes {dimension_semantics = [#tpu.dimension_semantics<parallel>, #tpu.dimension_semantics<arbitrary>], iteration_bounds = array<i64: 1, 1>, scalar_prefetch = 0 : i64, scratch_operands = 0 : i64, tpu.core_type = #tpu.core_type<tc>, window_params = [{transform_indices = @transform_0, window_bounds = array<i64: 16, 128>}, {transform_indices = @transform_1, window_bounds = array<i64: 1, 16, 128>}]} {
    %c0_i32 = arith.constant 0 : i32
    %0 = arith.cmpi eq, %arg1, %c0_i32 : i32
    %1 = arith.extui %0 : i1 to i32
    %c0_i32_0 = arith.constant 0 : i32
    %2 = arith.cmpi ne, %1, %c0_i32_0 : i32
    scf.if %2 {
      %cst_8 = arith.constant 0.000000e+00 : f32
      %11 = vector.broadcast %cst_8 : f32 to vector<1x16x128xf32>
      %c0_9 = arith.constant 0 : index
      %c0_10 = arith.constant 0 : index
      %c0_11 = arith.constant 0 : index
      %12 = vector.load %arg3[%c0_9, %c0_10, %c0_11] : memref<1x16x128xf32, #tpu.memory_space<vmem>>, vector<1x16x128xf32>
      tpu.vector_store %arg3[%c0_9, %c0_10, %c0_11], %11 {strides = array<i32>} : memref<1x16x128xf32, #tpu.memory_space<vmem>>, vector<1x16x128xf32>,
    } else {
    }
    %c0 = arith.constant 0 : index
    %c0_1 = arith.constant 0 : index
    %c0_2 = arith.constant 0 : index
    %3 = vector.load %arg3[%c0, %c0_1, %c0_2] : memref<1x16x128xf32, #tpu.memory_space<vmem>>, vector<1x16x128xf32>
    %c0_3 = arith.constant 0 : index
    %c0_4 = arith.constant 0 : index
    %4 = vector.load %arg2[%c0_3, %c0_4] : memref<16x128xf32, #tpu.memory_space<vmem>>, vector<16x128xf32>
    %5 = arith.mulf %4, %4 : vector<16x128xf32>
    %6 = vector.shape_cast %5 : vector<16x128xf32> to vector<1x16x128xf32>
    %cst = arith.constant dense<0.000000e+00> : vector<16x128xf32>
    %7 = vector.multi_reduction <add>, %6, %cst [0] : vector<1x16x128xf32> to vector<16x128xf32>
    %8 = vector.shape_cast %7 : vector<16x128xf32> to vector<1x16x128xf32>
    %9 = arith.addf %3, %8 : vector<1x16x128xf32>
    %c0_5 = arith.constant 0 : index
    %c0_6 = arith.constant 0 : index
    %c0_7 = arith.constant 0 : index
    %10 = vector.load %arg3[%c0_5, %c0_6, %c0_7] : memref<1x16x128xf32, #tpu.memory_space<vmem>>, vector<1x16x128xf32>
    tpu.vector_store %arg3[%c0_5, %c0_6, %c0_7], %9 {strides = array<i32>} : memref<1x16x128xf32, #tpu.memory_space<vmem>>, vector<1x16x128xf32>,
    return
  }
  func.func @transform_0(%arg0: i32, %arg1: i32) -> (i32, i32) {
    %c1_i32 = arith.constant 1 : i32
    %0 = arith.muli %arg0, %c1_i32 : i32
    %1 = arith.addi %0, %arg1 : i32
    %c0_i32 = arith.constant 0 : i32
    %c0_i32_0 = arith.constant 0 : i32
    return %1, %c0_i32 : i32, i32
  }
  func.func @transform_1(%arg0: i32, %arg1: i32) -> (i32, i32, i32) {
    %c0_i32 = arith.constant 0 : i32
    %c0_i32_0 = arith.constant 0 : i32
    %c0_i32_1 = arith.constant 0 : i32
    return %arg0, %c0_i32, %c0_i32_0 : i32, i32, i32
  }
}

</mosaic_0001>

<bundles_post_ra>
// kernel: tpu_custom_call.1
= control target key start
LH: loop header
LB: loop body
LE: loop exit
PB: predicated region body
PF: predicated region fallthrough
CT: control target
= control target key end

     0   :  { %6 = vsyncpa [#allocation3], 0  ;;  %s155_s0 = inlined_call_operand.hbm [shape: f32[16,128], index: 0, kind: input, shape index: {}]   ;;  %s156_s1 = inlined_call_operand.hbm [shape: f32[1,16,128], index: 1, kind: output, shape index: {}]  }
   0x1   :  { %7 = vsyncpa [#allocation4], 0  ;;  %s117_s6 = smov [#allocation2]   ;;  %s69_s10 = scalar_lea.hbm %s155_s0, 256 }
   0x2   :  { %s17_s7 = sshll.u32 %s117_s6, 4  ;;  %p70_p0 = scmp.ne.s32.totalorder %s155_s0, %s69_s10  ;;  %s18_s7 = int_to_ptr.vmem [resolvable:$true] %s17_s7 }
   0x3   :  { %p73_p1 = scmp.lt.u32.totalorder %s69_s10, %s155_s0 }
   0x5   :  { %p75_p2 = pnand %p73_p1, %p70_p0 }
   0x7   :  { %78 = shalt.err (!%p75_p2)
}
   0x8   :  { %s79_s15 = scalar_lea.vmem %s18_s7, 256  ;;  %p84_p4 = scmp.lt.s32.totalorder %s18_s7, %s18_s7 }
   0x9   :  { %p80_p3 = scmp.ne.s32.totalorder %s18_s7, %s79_s15  ;;  %p85_p5 = scmp.lt.s32.totalorder %s79_s15, %s79_s15 }
   0xb   :  { %p86_p6 = por %p85_p5, %p84_p4 }
   0xd   :  { %p87_p7 = pnand %p86_p6, %p80_p3 }
   0xf   :  { %90 = shalt.err (!%p87_p7)
}
  0x10   :  { %s118_s16 = smov 128   ;;  %s119_s17 = smov 8  }
  0x11   :  { %23 = dma.hbm_to_vmem [thread:$0]  %s155_s0, 256, %s18_s7, [#allocation3], %s118_s16, %s118_s16, %s119_s17  }
  0x12   :  { %113 = dma.done.wait [#allocation3], 256  }
  0x13   :  { %114 = vsyncadd [#allocation3], 4294967040  ;;  %v37_v0 = vld [vmem:[#allocation2] sm:$0xff]  ;;  %v38_v1 = vld [vmem:[#allocation2 + $0x8] sm:$0xff]  ;;  %s120_s20 = smov [#allocation5]  }
  0x14   :  { %s52_s21 = sshll.u32 %s120_s20, 4  ;;  %v39_v2 = vmul.f32 %v37_v0, %v37_v0  ;;  %v40_v3 = vmul.f32 %v38_v1, %v38_v1  ;;  %s53_s21 = int_to_ptr.vmem [resolvable:$true] %s52_s21 }
  0x15   :  { %s91_s22 = scalar_lea.vmem %s53_s21, 256  ;;  %p96_p9 = scmp.lt.s32.totalorder %s53_s21, %s53_s21 }
  0x16   :  { %45 = vst [vmem:[#allocation5] sm:$0xff] %v39_v2  ;;  %46 = vst [vmem:[#allocation5 + $0x8] sm:$0xff] %v40_v3  ;;  %p92_p8 = scmp.ne.s32.totalorder %s53_s21, %s91_s22  ;;  %p97_p10 = scmp.lt.s32.totalorder %s91_s22, %s91_s22 }
  0x18   :  { %p98_p11 = por %p97_p10, %p96_p9 }
  0x1a   :  { %p99_p12 = pnand %p98_p11, %p92_p8 }
  0x1c   :  { %102 = shalt.err (!%p99_p12)
}
  0x1d   :  { %s103_s24 = scalar_lea.hbm %s156_s1, 256 }
  0x1e   :  { %p104_p13 = scmp.ne.s32.totalorder %s156_s1, %s103_s24  ;;  %p107_p0 = scmp.lt.u32.totalorder %s103_s24, %s156_s1 }
  0x20   :  { %p109_p1 = pnand %p107_p0, %p104_p13 }
  0x22   :  { %112 = shalt.err (!%p109_p1)
}
  0x23   :  { %58 = dma.vmem_to_hbm [thread:$0]  %s53_s21, 256, %s156_s1, [#allocation4], %s118_s16, %s118_s16, %s119_s17  }
  0x24   :  { %115 = dma.done.wait [#allocation4], 256  }
  0x25   :  { %116 = vsyncadd [#allocation4], 4294967040 }
  0x26   :  { %62 = vsyncpa [#allocation3], 1 }
  0x27   :  { %63 = vsyncpa [#allocation4], 1 }

</bundles_post_ra>
